<compile_context>
chip_gen: v5e
topology: v5e:2x2
jax: 0.10.0
libtpu: 0.0.40
codegen_flags: <defaults>
</compile_context>

<pallas_src>
import functools

import jax
import jax.numpy as jnp
from jax import lax
from jax.experimental import pallas as pl
from jax.experimental.pallas import tpu as pltpu

_SUBLANE = 16   # bf16 sublane tile (also satisfies f32's 8)
_LANE = 128


def _round_up(x, m):
    return ((x + m - 1) // m) * m


def decoder_kernel(x_ref, w0_ref, b0_ref, w1_ref, b1_ref, w2_ref, b2_ref, o_ref):
    # bf16 operands -> single MXU pass; DEFAULT precision is exact for bf16
    # inputs, accumulation is f32 via preferred_element_type.
    prec = lax.Precision.DEFAULT

    # Layer 0: Linear + ReLU
    h = jnp.dot(x_ref[...], w0_ref[...],
                preferred_element_type=jnp.float32, precision=prec)
    h = jnp.maximum(h + b0_ref[...], 0.0)

    # Layer 1: Linear + ReLU
    h = jnp.dot(h.astype(w1_ref.dtype), w1_ref[...],
                preferred_element_type=jnp.float32, precision=prec)
    h = jnp.maximum(h + b1_ref[...], 0.0)

    # Output layer: Linear + Sigmoid (lane-padded to 128 output columns)
    h = jnp.dot(h.astype(w2_ref.dtype), w2_ref[...],
                preferred_element_type=jnp.float32, precision=prec)
    h = h + b2_ref[...]
    o_ref[...] = jax.nn.sigmoid(h).astype(o_ref.dtype)


@functools.partial(jax.jit, static_argnames=("tile_m", "out_dtype"))
def decoder_forward(x, params, *, tile_m=2048, out_dtype=jnp.float32):
    """x: [B, low_dims]. params: (in,out) weights and (1,out) biases."""
    w0, b0, w1, b1, w2, b2 = (params["w0"], params["b0"], params["w1"],
                              params["b1"], params["w2"], params["b2"])
    B, low_dims = x.shape
    hidden = w0.shape[1]
    high_dims = w2.shape[1]

    # bf16 compute path: weights + activations bf16, biases f32.
    x = x.astype(jnp.bfloat16)
    w0 = w0.astype(jnp.bfloat16)
    w1 = w1.astype(jnp.bfloat16)
    w2 = w2.astype(jnp.bfloat16)
    b0 = b0.astype(jnp.float32).reshape(1, hidden)
    b1 = b1.astype(jnp.float32).reshape(1, hidden)
    b2 = b2.astype(jnp.float32).reshape(1, high_dims)

    # Lane-dense output: zero-pad output columns to a multiple of 128.
    n_pad = _round_up(high_dims, _LANE)
    if n_pad != high_dims:
        w2 = jnp.pad(w2, ((0, 0), (0, n_pad - high_dims)))
        b2 = jnp.pad(b2, ((0, 0), (0, n_pad - high_dims)))

    # Batch tile: sublane-aligned, and clamped so the grid has >=2 steps
    # whenever the batch allows it (v7x megacore sharding).
    tm = min(int(tile_m), _round_up(pl.cdiv(B, 2), _SUBLANE))
    tm = max(_SUBLANE, _round_up(tm, _SUBLANE))
    B_pad = _round_up(B, tm)
    if B_pad != B:
        x = jnp.pad(x, ((0, B_pad - B), (0, 0)))
    grid = (B_pad // tm,)

    # x/out tiled along batch; weights & biases resident (constant index_map).
    x_spec = pl.BlockSpec((tm, low_dims), lambda i: (i, 0))
    out_spec = pl.BlockSpec((tm, n_pad), lambda i: (i, 0))

    def const_spec(arr):
        return pl.BlockSpec(arr.shape, lambda i: (0, 0))

    in_specs = [x_spec,
                const_spec(w0), const_spec(b0),
                const_spec(w1), const_spec(b1),
                const_spec(w2), const_spec(b2)]

    weight_bytes = sum(int(a.size) * jnp.dtype(a.dtype).itemsize
                       for a in (w0, b0, w1, b1, w2, b2))
    cost = pl.CostEstimate(
        flops=2 * B_pad * (low_dims * hidden + hidden * hidden + hidden * n_pad),
        transcendentals=B_pad * n_pad,  # one exp per sigmoid output element
        bytes_accessed=B_pad * low_dims * 2                       # bf16 x
        + B_pad * n_pad * jnp.dtype(out_dtype).itemsize           # output
        + weight_bytes,
    )

    out = pl.pallas_call(
        decoder_kernel,
        out_shape=jax.ShapeDtypeStruct((B_pad, n_pad), out_dtype),
        grid=grid,
        in_specs=in_specs,
        out_specs=out_spec,
        compiler_params=pltpu.CompilerParams(
            dimension_semantics=("parallel",)),
        cost_estimate=cost,
    )(x, w0, b0, w1, b1, w2, b2)

    # Drop padded batch rows and padded output columns.
    return out[:B, :high_dims]


def init_params(key, low_dims, hidden, high_dims, dtype=jnp.float32):
    """Deterministic synthetic init (PyTorch-style uniform fan-in scaling)."""
    ks = jax.random.split(key, 6)

    def lin(kw, kb, fan_in, fan_out):
        bound = 1.0 / jnp.sqrt(fan_in)
        w = jax.random.uniform(kw, (fan_in, fan_out), jnp.float32, -bound, bound)
        b = jax.random.uniform(kb, (1, fan_out), jnp.float32, -bound, bound)
        return w.astype(dtype), b.astype(dtype)

    w0, b0 = lin(ks[0], ks[1], low_dims, hidden)
    w1, b1 = lin(ks[2], ks[3], hidden, hidden)
    w2, b2 = lin(ks[4], ks[5], hidden, high_dims)
    return {"w0": w0, "b0": b0, "w1": w1, "b1": b1, "w2": w2, "b2": b2}


def decoder_reference(x, p):
    """Pure-JAX reference mimicking the kernel's bf16 operand rounding."""
    bf = jnp.bfloat16
    f32 = jnp.float32
    w0 = p["w0"].astype(bf).astype(f32)
    w1 = p["w1"].astype(bf).astype(f32)
    w2 = p["w2"].astype(bf).astype(f32)
    h = x.astype(bf).astype(f32) @ w0 + p["b0"].astype(f32)
    h = jnp.maximum(h, 0.0)
    h = h.astype(bf).astype(f32) @ w1 + p["b1"].astype(f32)
    h = jnp.maximum(h, 0.0)
    h = h.astype(bf).astype(f32) @ w2 + p["b2"].astype(f32)
    return jax.nn.sigmoid(h)


if __name__ == "__main__":
    # config: low_dims=8, hidden_shape=32, high_dims=64, num_layers=2
    low_dims, hidden, high_dims = 8, 32, 64

    key = jax.random.PRNGKey(0)
    kx, kp, kx2 = jax.random.split(key, 3)
    params = init_params(kp, low_dims, hidden, high_dims)

    # --- small-batch check (single tile) ---
    batch = 8
    x = jax.random.normal(kx, (batch, low_dims), jnp.float32)
    out = jax.block_until_ready(decoder_forward(x, params))
    ref = decoder_reference(x, params)
    assert out.shape == (batch, high_dims)
    assert jnp.allclose(out, ref, atol=1e-2, rtol=1e-2), "mismatch vs reference (B=8)"

    # --- multi-tile check with ragged last tile (exercises grid + padding) ---
    batch2 = 300
    x2 = jax.random.normal(kx2, (batch2, low_dims), jnp.float32)
    out2 = jax.block_until_ready(decoder_forward(x2, params, tile_m=128))
    ref2 = decoder_reference(x2, params)
    assert out2.shape == (batch2, high_dims)
    assert jnp.allclose(out2, ref2, atol=1e-2, rtol=1e-2), "mismatch vs reference (B=300)"

    print("KERNEL_OK")
</pallas_src>

<mosaic_0001>
module attributes {stable_mosaic.version = 11 : i64} {
  func.func @decoder_kernel(%arg0: i32, %arg1: memref<16x8xbf16, #tpu.memory_space<vmem>>, %arg2: memref<8x32xbf16, #tpu.memory_space<vmem>>, %arg3: memref<1x32xf32, #tpu.memory_space<vmem>>, %arg4: memref<32x32xbf16, #tpu.memory_space<vmem>>, %arg5: memref<1x32xf32, #tpu.memory_space<vmem>>, %arg6: memref<32x128xbf16, #tpu.memory_space<vmem>>, %arg7: memref<1x128xf32, #tpu.memory_space<vmem>>, %arg8: memref<16x128xf32, #tpu.memory_space<vmem>>) attributes {dimension_semantics = [#tpu.dimension_semantics<parallel>], iteration_bounds = array<i64: 1>, scalar_prefetch = 0 : i64, scratch_operands = 0 : i64, tpu.core_type = #tpu.core_type<tc>, window_params = [{transform_indices = @transform_0, window_bounds = array<i64: 16, 8>}, {pipeline_mode = #tpu.pipeline_mode<synchronous>, transform_indices = @transform_1, window_bounds = array<i64: 8, 32>}, {pipeline_mode = #tpu.pipeline_mode<synchronous>, transform_indices = @transform_2, window_bounds = array<i64: 1, 32>}, {pipeline_mode = #tpu.pipeline_mode<synchronous>, transform_indices = @transform_3, window_bounds = array<i64: 32, 32>}, {pipeline_mode = #tpu.pipeline_mode<synchronous>, transform_indices = @transform_4, window_bounds = array<i64: 1, 32>}, {pipeline_mode = #tpu.pipeline_mode<synchronous>, transform_indices = @transform_5, window_bounds = array<i64: 32, 128>}, {pipeline_mode = #tpu.pipeline_mode<synchronous>, transform_indices = @transform_6, window_bounds = array<i64: 1, 128>}, {transform_indices = @transform_7, window_bounds = array<i64: 16, 128>}]} {
    %c0 = arith.constant 0 : index
    %c0_0 = arith.constant 0 : index
    %0 = vector.load %arg1[%c0, %c0_0] : memref<16x8xbf16, #tpu.memory_space<vmem>>, vector<16x8xbf16>
    %c0_1 = arith.constant 0 : index
    %c0_2 = arith.constant 0 : index
    %1 = vector.load %arg2[%c0_1, %c0_2] : memref<8x32xbf16, #tpu.memory_space<vmem>>, vector<8x32xbf16>
    %cst = arith.constant dense<0.000000e+00> : vector<16x32xf32>
    %2 = tpu.matmul %0, %1, %cst {dimension_numbers = #tpu.dot_dimension_numbers<[1], [0], [0], [1], [0, 0, 1, 1], [], []>} : vector<16x8xbf16>, vector<8x32xbf16>, vector<16x32xf32> -> vector<16x32xf32>
    %c0_3 = arith.constant 0 : index
    %c0_4 = arith.constant 0 : index
    %3 = vector.load %arg3[%c0_3, %c0_4] : memref<1x32xf32, #tpu.memory_space<vmem>>, vector<1x32xf32>
    %4 = vector.broadcast %3 : vector<1x32xf32> to vector<16x32xf32>
    %5 = arith.addf %2, %4 : vector<16x32xf32>
    %cst_5 = arith.constant 0.000000e+00 : f32
    %6 = vector.broadcast %cst_5 : f32 to vector<16x32xf32>
    %7 = arith.maximumf %5, %6 : vector<16x32xf32>
    %8 = arith.truncf %7 : vector<16x32xf32> to vector<16x32xbf16>
    %c0_6 = arith.constant 0 : index
    %c0_7 = arith.constant 0 : index
    %9 = vector.load %arg4[%c0_6, %c0_7] : memref<32x32xbf16, #tpu.memory_space<vmem>>, vector<32x32xbf16>
    %cst_8 = arith.constant dense<0.000000e+00> : vector<16x32xf32>
    %10 = tpu.matmul %8, %9, %cst_8 {dimension_numbers = #tpu.dot_dimension_numbers<[1], [0], [0], [1], [0, 0, 1, 1], [], []>} : vector<16x32xbf16>, vector<32x32xbf16>, vector<16x32xf32> -> vector<16x32xf32>
    %c0_9 = arith.constant 0 : index
    %c0_10 = arith.constant 0 : index
    %11 = vector.load %arg5[%c0_9, %c0_10] : memref<1x32xf32, #tpu.memory_space<vmem>>, vector<1x32xf32>
    %12 = vector.broadcast %11 : vector<1x32xf32> to vector<16x32xf32>
    %13 = arith.addf %10, %12 : vector<16x32xf32>
    %cst_11 = arith.constant 0.000000e+00 : f32
    %14 = vector.broadcast %cst_11 : f32 to vector<16x32xf32>
    %15 = arith.maximumf %13, %14 : vector<16x32xf32>
    %16 = arith.truncf %15 : vector<16x32xf32> to vector<16x32xbf16>
    %c0_12 = arith.constant 0 : index
    %c0_13 = arith.constant 0 : index
    %17 = vector.load %arg6[%c0_12, %c0_13] : memref<32x128xbf16, #tpu.memory_space<vmem>>, vector<32x128xbf16>
    %cst_14 = arith.constant dense<0.000000e+00> : vector<16x128xf32>
    %18 = tpu.matmul %16, %17, %cst_14 {dimension_numbers = #tpu.dot_dimension_numbers<[1], [0], [0], [1], [0, 0, 1, 1], [], []>} : vector<16x32xbf16>, vector<32x128xbf16>, vector<16x128xf32> -> vector<16x128xf32>
    %c0_15 = arith.constant 0 : index
    %c0_16 = arith.constant 0 : index
    %19 = vector.load %arg7[%c0_15, %c0_16] : memref<1x128xf32, #tpu.memory_space<vmem>>, vector<1x128xf32>
    %20 = vector.broadcast %19 : vector<1x128xf32> to vector<16x128xf32>
    %21 = arith.addf %18, %20 : vector<16x128xf32>
    %22 = arith.negf %21 : vector<16x128xf32>
    %23 = math.exp %22 : vector<16x128xf32>
    %cst_17 = arith.constant 1.000000e+00 : f32
    %24 = vector.broadcast %cst_17 : f32 to vector<16x128xf32>
    %25 = arith.addf %24, %23 : vector<16x128xf32>
    %26 = arith.divf %24, %25 : vector<16x128xf32>
    %c0_18 = arith.constant 0 : index
    %c0_19 = arith.constant 0 : index
    %27 = vector.load %arg8[%c0_18, %c0_19] : memref<16x128xf32, #tpu.memory_space<vmem>>, vector<16x128xf32>
    tpu.vector_store %arg8[%c0_18, %c0_19], %26 {strides = array<i32>} : memref<16x128xf32, #tpu.memory_space<vmem>>, vector<16x128xf32>,
    return
  }
  func.func @transform_0(%arg0: i32) -> (i32, i32) {
    %c0_i32 = arith.constant 0 : i32
    %c0_i32_0 = arith.constant 0 : i32
    return %arg0, %c0_i32 : i32, i32
  }
  func.func @transform_1(%arg0: i32) -> (i32, i32) {
    %c0_i32 = arith.constant 0 : i32
    %c0_i32_0 = arith.constant 0 : i32
    %c0_i32_1 = arith.constant 0 : i32
    return %c0_i32, %c0_i32_0 : i32, i32
  }
  func.func @transform_2(%arg0: i32) -> (i32, i32) {
    %c0_i32 = arith.constant 0 : i32
    %c0_i32_0 = arith.constant 0 : i32
    %c0_i32_1 = arith.constant 0 : i32
    return %c0_i32, %c0_i32_0 : i32, i32
  }
  func.func @transform_3(%arg0: i32) -> (i32, i32) {
    %c0_i32 = arith.constant 0 : i32
    %c0_i32_0 = arith.constant 0 : i32
    %c0_i32_1 = arith.constant 0 : i32
    return %c0_i32, %c0_i32_0 : i32, i32
  }
  func.func @transform_4(%arg0: i32) -> (i32, i32) {
    %c0_i32 = arith.constant 0 : i32
    %c0_i32_0 = arith.constant 0 : i32
    %c0_i32_1 = arith.constant 0 : i32
    return %c0_i32, %c0_i32_0 : i32, i32
  }
  func.func @transform_5(%arg0: i32) -> (i32, i32) {
    %c0_i32 = arith.constant 0 : i32
    %c0_i32_0 = arith.constant 0 : i32
    %c0_i32_1 = arith.constant 0 : i32
    return %c0_i32, %c0_i32_0 : i32, i32
  }
  func.func @transform_6(%arg0: i32) -> (i32, i32) {
    %c0_i32 = arith.constant 0 : i32
    %c0_i32_0 = arith.constant 0 : i32
    %c0_i32_1 = arith.constant 0 : i32
    return %c0_i32, %c0_i32_0 : i32, i32
  }
  func.func @transform_7(%arg0: i32) -> (i32, i32) {
    %c0_i32 = arith.constant 0 : i32
    %c0_i32_0 = arith.constant 0 : i32
    return %arg0, %c0_i32 : i32, i32
  }
}

</mosaic_0001>

<bundles_post_ra>
// kernel: decoder_forward.1
= control target key start
LH: loop header
LB: loop body
LE: loop exit
PB: predicated region body
PF: predicated region fallthrough
CT: control target
= control target key end

     0   :  { %vm43_vm0 = vcmask 1043456   ;;  %vm39_vm1 = vcmask 64512   ;;  %vm84_vm2 = vcmask 261120   ;;  %s302_s1 = inlined_call_operand.vmem [shape: bf16[8,32], index: 1, kind: input, shape index: {}]   ;;  %s303_s0 = inlined_call_operand.vmem [shape: bf16[16,8], index: 0, kind: input, shape index: {}]   ;;  %s304_s2 = inlined_call_operand.vmem [shape: f32[1,32], index: 2, kind: input, shape index: {}]   ;;  %s305_s4 = inlined_call_operand.vmem [shape: f32[1,32], index: 4, kind: input, shape index: {}]   ;;  %s306_s3 = inlined_call_operand.vmem [shape: bf16[32,32], index: 3, kind: input, shape index: {}]   ;;  %s307_s6 = inlined_call_operand.vmem [shape: f32[1,128], index: 6, kind: input, shape index: {}]   ;;  %s308_s5 = inlined_call_operand.vmem [shape: bf16[32,128], index: 5, kind: input, shape index: {}]   ;;  %s309_s7 = inlined_call_operand.vmem [shape: f32[16,128], index: 7, kind: output, shape index: {}]  }
   0x1   :  { %v29_v0 = vld [vmem:[%s302_s1] sm:$0xf]  ;;  %v213_v3 = vld [vmem:[%s306_s3 + $0x8] sm:$0xff] }
   0x2   :  { %v45_v1 = vsel %vm43_vm0, %v29_v0, 0  ;;  %v211_v2 = vld [vmem:[%s303_s0] sm:$0xff]  ;;  %94 = vmatpush.bf16.msra.mxu1 %v213_v3  ;;  %v215_v13 = vld [vmem:[%s308_s5 + $0x8] sm:$0xff] }
   0x3   :  { %54 = vmatpush.bf16.msra.mxu0 %v45_v1  ;;  %v212_v4 = vld [vmem:[%s306_s3] sm:$0xff]  ;;  %134 = vmatpush.bf16.msra.mxu2 %v215_v13 }
   0x4   :  { %v216_v6 = vld [vmem:[%s304_s2] ss:$0 sm:$0xff] }
   0x5   :  { %v214_v14 = vld [vmem:[%s308_s5] sm:$0xff] }
   0x6   :  { %190 = vmatmul.msk.bf16.vlgmr.msra.gmra.mxu0 %vm39_vm1, %v211_v2  ;;  %95 = vmatpush.bf16.msra.mxu1 %v212_v4  ;;  %v217_v16 = vld [vmem:[%s305_s4] ss:$0 sm:$0xff] }
   0x7   :  { %135 = vmatpush.bf16.msra.mxu2 %v214_v14  ;;  %v218_v23 = vld [vmem:[%s307_s6] ss:$0 sm:$0xff] }
  0x83   :  { %v56_v5 = vpop.f32.mrf.mxu0 }
  0x84   :  { %v57_v7 = vadd.f32 %v216_v6, %v56_v5 }
  0x86   :  { %v61_v10 = vmax.f32 %v57_v7, 0.0 }
  0x8b   :  { %v58_v8 = vpop.f32.mrf.mxu0 }
  0x8c   :  { %v59_v9 = vadd.f32 %v216_v6, %v58_v8 }
  0x8e   :  { %v62_v11 = vmax.f32 %v59_v9, 0.0 }
  0x90   :  { %v63_v12 = vpack.c.bf16 %v62_v11, %v61_v10 }
  0x92   :  { %199 = vmatmul.msk.bf16.vlgmr.msra.gmra.mxu1 %vm84_vm2, %v63_v12 }
 0x10f   :  { %v97_v15 = vpop.f32.mrf.mxu1 }
 0x110   :  { %v98_v17 = vadd.f32 %v217_v16, %v97_v15 }
 0x112   :  { %v102_v20 = vmax.f32 %v98_v17, 0.0 }
 0x117   :  { %v99_v18 = vpop.f32.mrf.mxu1 }
 0x118   :  { %v100_v19 = vadd.f32 %v217_v16, %v99_v18 }
 0x11a   :  { %v103_v21 = vmax.f32 %v100_v19, 0.0 }
 0x11c   :  { %v104_v22 = vpack.c.bf16 %v103_v21, %v102_v20 }
 0x11e   :  { %208 = vmatmul.msk.bf16.vlgmr.msra.gmra.mxu2 %vm84_vm2, %v104_v22 }
 0x1a1   :  { %v137_v24 = vpop.f32.mrf.mxu2 }
 0x1a2   :  { %v138_v25 = vadd.f32 %v218_v23, %v137_v24 }
 0x1a4   :  { %v209_v26 = vmul.f32 -1.442695, %v138_v25 }
 0x1a6   :  { %219 = vpow2.f32 %v209_v26 }
 0x1a9   :  { %v139_v27 = vpop.f32.mrf.mxu2 }
 0x1aa   :  { %v140_v28 = vadd.f32 %v218_v23, %v139_v27 }
 0x1ac   :  { %v220_v29 = vpop.eup %219  ;;  %v210_v30 = vmul.f32 -1.442695, %v140_v28 }
 0x1ad   :  { %v148_v31 = vadd.f32 1.0, %v220_v29 }
 0x1ae   :  { %221 = vpow2.f32 %v210_v30 }
 0x1af   :  { %223 = vrcp.f32 %v148_v31  ;;  %v161_v37 = vand.u32 2147483648, %v148_v31  ;;  %v159_v39 = vand.u32 2147483647, %v148_v31  ;;  %vm155_vm4 = vweird.f32 %v148_v31 }
 0x1b1   :  { %v162_v42 = vor.u32 1.1754944e-38, %v161_v37  ;;  %vm160_vm6 = vcmp.eq.f32.partialorder %v159_v39, 8.507059e+37 }
 0x1b4   :  { %v222_v32 = vpop.eup %221 }
 0x1b5   :  { %v224_v33 = vpop.eup %223  ;;  %v149_v34 = vadd.f32 1.0, %v222_v32 }
 0x1b6   :  { %v151_v35 = vmul.f32 %v224_v33, %v148_v31  ;;  %vm156_vm3 = vweird.f32 %v224_v33 }
 0x1b7   :  { %225 = vrcp.f32 %v149_v34  ;;  %vm157_vm5 = vmor %vm155_vm4, %vm156_vm3  ;;  %v176_v47 = vand.u32 2147483648, %v149_v34  ;;  %v174_v49 = vand.u32 2147483647, %v149_v34  ;;  %vm170_vm8 = vweird.f32 %v149_v34 }
 0x1b8   :  { %v152_v36 = vsub.f32 1.0, %v151_v35 }
 0x1b9   :  { %v177_v51 = vor.u32 1.1754944e-38, %v176_v47  ;;  %vm175_vm10 = vcmp.eq.f32.partialorder %v174_v49, 8.507059e+37 }
 0x1ba   :  { %v153_v38 = vmul.f32 %v224_v33, %v152_v36 }
 0x1bc   :  { %v154_v40 = vadd.f32 %v224_v33, %v153_v38 }
 0x1bd   :  { %v226_v41 = vpop.eup %225 }
 0x1be   :  { %v158_v43 = vsel %vm157_vm5, %v224_v33, %v154_v40  ;;  %v166_v44 = vmul.f32 %v226_v41, %v149_v34  ;;  %vm171_vm7 = vweird.f32 %v226_v41 }
 0x1bf   :  { %v163_v45 = vsel %vm160_vm6, %v162_v42, %v158_v43  ;;  %vm172_vm9 = vmor %vm170_vm8, %vm171_vm7 }
 0x1c0   :  { %180 = vst [vmem:[%s309_s7] sm:$0xff] %v163_v45  ;;  %v167_v46 = vsub.f32 1.0, %v166_v44 }
 0x1c2   :  { %v168_v48 = vmul.f32 %v226_v41, %v167_v46 }
 0x1c4   :  { %v169_v50 = vadd.f32 %v226_v41, %v168_v48 }
 0x1c6   :  { %v173_v52 = vsel %vm172_vm9, %v226_v41, %v169_v50 }
 0x1c7   :  { %v178_v53 = vsel %vm175_vm10, %v177_v51, %v173_v52 }
 0x1c8   :  { %181 = vst [vmem:[%s309_s7 + $0x8] sm:$0xff] %v178_v53 }

</bundles_post_ra>
